<compile_context>
chip_gen: v7x
topology: tpu7x:2x2x1
jax: 0.10.0
libtpu: 0.0.40
codegen_flags: <defaults>
</compile_context>

<pallas_src>
import functools

import jax
import jax.numpy as jnp
from jax.experimental import pallas as pl
from jax.experimental.pallas import tpu as pltpu

EPS = 1e-5  # nn.GroupNorm default eps


def _round_up(a, b):
    return ((a + b - 1) // b) * b


def _pick_tile(total, unit, cap):
    """Largest tile t (multiple of `unit`, dividing `total`, lane-legal) with t <= cap."""
    legal = [t for t in range(unit, total + 1, unit)
             if total % t == 0 and (t % 128 == 0 or t == total)]
    under = [t for t in legal if t <= cap]
    t = max(under) if under else min(legal)
    if t > 4 * cap:  # never silently blow the VMEM budget
        raise ValueError(f"no VMEM-safe tile for total={total} unit={unit} cap={cap}")
    return t


# ----------------------------------------------------------------------------
# Stage 1: pre_norm_attn (GN1 folded affine -> linear self-attention) + residual,
#          plus fused partial moments of x1 for GN2.
# ----------------------------------------------------------------------------
def _attn_x1_kernel(aff_ref, x_ref, mask_ref, selt_ref, w_ref, bias_ref,
                    x1_ref, mom_ref, *, C, N, DQP):
    # aff_ref : (C, 2)        f32  per-(sample, channel) GN1 scale / shift
    # x_ref   : (C, TPN)      f32  block (TPN = TP * N contiguous pixels*patches)
    # mask_ref: (TPN, TP)     bf16 segment selector (j // N == p), precomputed
    # selt_ref: (TP, TPN)     bf16 broadcast-back selector (transpose of mask)
    # w_ref   : (DQP + C, C)  bf16 [fused kvq weight ; out_proj weight]
    # bias_ref: (DQP, 2)      f32  [kvq bias | out_proj bias (first C rows)]
    TPN = x_ref.shape[-1]

    x = x_ref[...]                                   # f32 (C, TPN)
    scale = aff_ref[:, 0:1]                          # (C, 1)
    shift = aff_ref[:, 1:2]
    y = x * scale + shift                            # GroupNorm(1) pre-folded affine
    yb = y.astype(jnp.bfloat16)

    b_kvq = bias_ref[:, 0:1]                         # (DQP, 1)
    b_o = bias_ref[0:C, 1:2]                         # (C, 1)

    # Fused qkv projection: one MXU matmul, rows ordered [key; value; query; pad].
    kvq = jnp.dot(w_ref[0:DQP, :], yb,
                  preferred_element_type=jnp.float32) + b_kvq        # (DQP, TPN) f32
    k = kvq[0:C, :]                                  # (C, TPN)
    v = kvq[C:2 * C, :]                              # (C, TPN)
    q = kvq[2 * C:2 * C + 1, :]                      # (1, TPN)  lane-dense

    # Softmax over each length-N segment, kept lane-dense.  A single per-tile max is
    # enough for stability (normalization below is per segment).
    e = jnp.exp(q - jnp.max(q, axis=-1, keepdims=True))              # (1, TPN) f32

    mask = mask_ref[...]                             # (TPN, TP) bf16, VMEM-resident

    # Per-segment softmax denominator via a tiny bf16 MXU matmul.
    e8 = jnp.broadcast_to(e.astype(jnp.bfloat16), (8, TPN))          # sublane bcast
    den = jnp.dot(e8, mask, preferred_element_type=jnp.float32)      # (8, TP)
    inv_den = pl.reciprocal(den[0:1, :], approx=True)                # (1, TP)

    # ctx[c, p] = (sum_n k[c, p*N+n] * e[p*N+n]) / den[p]  -- bf16 MXU reduce over N.
    ke = (k * e).astype(jnp.bfloat16)                                 # (C, TPN)
    ctx = jnp.dot(ke, mask, preferred_element_type=jnp.float32) * inv_den   # (C, TP)

    # Broadcast ctx back over the N patches of each pixel (bf16 selector matmul).
    ctx_m = jnp.dot(ctx.astype(jnp.bfloat16), selt_ref[...],
                    preferred_element_type=jnp.float32)               # (C, TPN)

    out = jnp.maximum(v, 0.0) * ctx_m                                 # relu(v) * ctx

    attn = jnp.dot(w_ref[DQP:DQP + C, :], out.astype(jnp.bfloat16),
                   preferred_element_type=jnp.float32) + b_o          # out_proj

    x1 = x + attn                                                     # residual (f32)
    x1_ref[...] = x1.astype(x1_ref.dtype)

    # Fused GroupNorm-2 partial moments of x1 (avoids a separate HBM pass over x1).
    s = jnp.sum(x1, axis=1, keepdims=True)                            # (C, 1) lane reduce
    ss = jnp.sum(x1 * x1, axis=1, keepdims=True)                      # (C, 1)
    s = jnp.sum(s, axis=0, keepdims=True)                             # (1, 1)
    ss = jnp.sum(ss, axis=0, keepdims=True)                           # (1, 1)
    lane = jax.lax.broadcasted_iota(jnp.int32, mom_ref.shape, 1)      # (8, 128)
    mom_ref[...] = jnp.where(lane == 0, s, jnp.where(lane == 1, ss, 0.0))


# ----------------------------------------------------------------------------
# Stage 2: pre_norm_ffn (GN2 folded affine -> conv1x1+SiLU -> conv1x1) + residual
# ----------------------------------------------------------------------------
def _ffn_kernel(aff_ref, x_ref, wf1_ref, wf2_ref, bias_ref, o_ref, *, C, F):
    x1 = x_ref[...]                                  # (C, TM) f32
    scale = aff_ref[:, 0:1]
    shift = aff_ref[:, 1:2]
    y = x1 * scale + shift                           # GroupNorm(1) pre-folded affine

    b1 = bias_ref[0:F, 0:1]                          # (F, 1)
    b2 = bias_ref[0:C, 1:2]                          # (C, 1)

    h = jnp.dot(wf1_ref[...], y.astype(jnp.bfloat16),
                preferred_element_type=jnp.float32) + b1              # (F, TM)
    h = h * jax.nn.sigmoid(h)                        # SiLU in f32 (EUP)
    f = jnp.dot(wf2_ref[...], h.astype(jnp.bfloat16),
                preferred_element_type=jnp.float32) + b2              # (C, TM)

    o_ref[...] = (x1 + f).astype(o_ref.dtype)        # residual


# ----------------------------------------------------------------------------
# Wrapper
# ----------------------------------------------------------------------------
def _gn_affine(x_bcm, gamma, beta):
    """Per-(sample, channel) scale/shift implementing GroupNorm(num_groups=1)."""
    mu = jnp.mean(x_bcm, axis=(1, 2))
    var = jnp.mean(jnp.square(x_bcm - mu[:, None, None]), axis=(1, 2))
    rstd = jax.lax.rsqrt(var + EPS)
    scale = rstd[:, None] * gamma[None, :]                            # (B, C)
    shift = beta[None, :] - mu[:, None] * scale                       # (B, C)
    return jnp.stack([scale, shift], axis=-1).astype(jnp.float32)     # (B, C, 2)


def _gn_affine_from_moments(s, ss, count, gamma, beta):
    """GroupNorm(1) scale/shift from fused per-sample sum / sum-of-squares."""
    mu = s / count
    var = jnp.maximum(ss / count - mu * mu, 0.0)
    rstd = jax.lax.rsqrt(var + EPS)
    scale = rstd[:, None] * gamma[None, :]
    shift = beta[None, :] - mu[:, None] * scale
    return jnp.stack([scale, shift], axis=-1).astype(jnp.float32)


@jax.jit
def linear_attn_ffn(x_bcpn, params):
    """x_bcpn: (B, C, P, N) -- same axis convention as the PyTorch module."""
    B, C, P, N = x_bcpn.shape
    M = P * N
    F = params["Wf1"].shape[0]
    DQP = params["bvec1"].shape[0]

    x = x_bcpn.reshape(B, C, M).astype(jnp.float32)   # free reshape, no HBM transpose

    # 24 MiB: safely under v7x's 64 MiB VMEM per TC, far above the ~4-8 MiB needed.
    cparams = pltpu.CompilerParams(
        dimension_semantics=("parallel", "parallel"),
        vmem_limit_bytes=24 * 1024 * 1024,
    )

    # --- stage 1: attention branch + residual -> x1, plus fused GN2 moments ---
    aff1 = _gn_affine(x, params["gn1_w"], params["gn1_b"])
    TPN = _pick_tile(M, N, 1024)            # tiles are whole pixel-rows (full N each)
    TP = TPN // N
    Gm1 = M // TPN
    grid1 = (B, Gm1)                        # B=2 keeps total steps even (v7x megacore)

    # Precomputed structural selectors (data independent, constant-folded under jit,
    # DMA'd once and VMEM-resident via index_map (0, 0)).
    seg = jnp.arange(TPN, dtype=jnp.int32) // N
    mask = (seg[:, None] == jnp.arange(TP, dtype=jnp.int32)[None, :]
            ).astype(jnp.bfloat16)                                    # (TPN, TP)
    sel_t = mask.T                                                    # (TP, TPN)

    x1, mom = pl.pallas_call(
        functools.partial(_attn_x1_kernel, C=C, N=N, DQP=DQP),
        out_shape=(jax.ShapeDtypeStruct((B, C, M), jnp.float32),
                   jax.ShapeDtypeStruct((B, Gm1, 8, 128), jnp.float32)),
        grid=grid1,
        in_specs=[
            pl.BlockSpec((None, C, 2), lambda b, m: (b, 0, 0)),
            pl.BlockSpec((None, C, TPN), lambda b, m: (b, 0, m)),
            pl.BlockSpec((TPN, TP), lambda b, m: (0, 0)),
            pl.BlockSpec((TP, TPN), lambda b, m: (0, 0)),
            pl.BlockSpec(params["W1"].shape, lambda b, m: (0, 0)),
            pl.BlockSpec(params["bvec1"].shape, lambda b, m: (0, 0)),
        ],
        out_specs=[
            pl.BlockSpec((None, C, TPN), lambda b, m: (b, 0, m)),
            pl.BlockSpec((None, None, 8, 128), lambda b, m: (b, m, 0, 0)),
        ],
        compiler_params=cparams,
    )(aff1, x, mask, sel_t, params["W1"], params["bvec1"])

    # --- stage 2: FFN branch + residual (GN2 stats from fused stage-1 moments) ---
    s_b = jnp.sum(mom[:, :, 0, 0], axis=1)            # (B,)
    ss_b = jnp.sum(mom[:, :, 0, 1], axis=1)           # (B,)
    aff2 = _gn_affine_from_moments(s_b, ss_b, float(C * M),
                                   params["gn2_w"], params["gn2_b"])

    TM = _pick_tile(M, 1, 4096)
    grid2 = (B, M // TM)
    out = pl.pallas_call(
        functools.partial(_ffn_kernel, C=C, F=F),
        out_shape=jax.ShapeDtypeStruct((B, C, M), jnp.float32),
        grid=grid2,
        in_specs=[
            pl.BlockSpec((None, C, 2), lambda b, m: (b, 0, 0)),
            pl.BlockSpec((None, C, TM), lambda b, m: (b, 0, m)),
            pl.BlockSpec(params["Wf1"].shape, lambda b, m: (0, 0)),
            pl.BlockSpec(params["Wf2"].shape, lambda b, m: (0, 0)),
            pl.BlockSpec(params["bvec2"].shape, lambda b, m: (0, 0)),
        ],
        out_specs=pl.BlockSpec((None, C, TM), lambda b, m: (b, 0, m)),
        compiler_params=cparams,
    )(aff2, x1, params["Wf1"], params["Wf2"], params["bvec2"])

    return out.reshape(B, C, P, N).astype(x_bcpn.dtype)


# ----------------------------------------------------------------------------
# Parameters (PyTorch layouts), packing, and a pure-JAX f32 reference
# ----------------------------------------------------------------------------
def init_params(key, C, F):
    ks = jax.random.split(key, 12)
    s = 0.1

    def bf16_round(w):  # weights stored at bf16 precision (kernel cast is exact)
        return w.astype(jnp.bfloat16).astype(jnp.float32)

    gn1_w = jax.random.normal(ks[0], (C,), jnp.float32) * s + 1.0
    gn1_b = jax.random.normal(ks[1], (C,), jnp.float32) * s
    w_qkv = bf16_round(jax.random.normal(ks[2], (2 * C + 1, C), jnp.float32) * s)
    b_qkv = jax.random.normal(ks[3], (2 * C + 1,), jnp.float32) * s
    w_o = bf16_round(jax.random.normal(ks[4], (C, C), jnp.float32) * s)
    b_o = jax.random.normal(ks[5], (C,), jnp.float32) * s
    gn2_w = jax.random.normal(ks[6], (C,), jnp.float32) * s + 1.0
    gn2_b = jax.random.normal(ks[7], (C,), jnp.float32) * s
    w_f1 = bf16_round(jax.random.normal(ks[8], (F, C), jnp.float32) * s)
    b_f1 = jax.random.normal(ks[9], (F,), jnp.float32) * s
    w_f2 = bf16_round(jax.random.normal(ks[10], (C, F), jnp.float32) * s)
    b_f2 = jax.random.normal(ks[11], (C,), jnp.float32) * s
    return (gn1_w, gn1_b, w_qkv, b_qkv, w_o, b_o,
            gn2_w, gn2_b, w_f1, b_f1, w_f2, b_f2)


def pack_params(raw, C, F):
    (gn1_w, gn1_b, w_qkv, b_qkv, w_o, b_o,
     gn2_w, gn2_b, w_f1, b_f1, w_f2, b_f2) = raw
    DQ = 2 * C + 1
    DQP = _round_up(DQ, 8)

    # torch.split(qkv, [1, C, C], dim=1): row 0 = query, rows 1..C = key, C+1..2C = value.
    # Re-order to [key; value; query; pad] so every in-kernel slice is 8-sublane aligned.
    w_kvq = jnp.zeros((DQP, C), jnp.float32)
    w_kvq = w_kvq.at[0:C].set(w_qkv[1:1 + C])
    w_kvq = w_kvq.at[C:2 * C].set(w_qkv[1 + C:DQ])
    w_kvq = w_kvq.at[2 * C].set(w_qkv[0])
    b_kvq = jnp.zeros((DQP,), jnp.float32)
    b_kvq = b_kvq.at[0:C].set(b_qkv[1:1 + C])
    b_kvq = b_kvq.at[C:2 * C].set(b_qkv[1 + C:DQ])
    b_kvq = b_kvq.at[2 * C].set(b_qkv[0])

    W1 = jnp.concatenate([w_kvq, w_o], axis=0).astype(jnp.bfloat16)   # (DQP + C, C)
    bvec1 = jnp.zeros((DQP, 2), jnp.float32)
    bvec1 = bvec1.at[:, 0].set(b_kvq)
    bvec1 = bvec1.at[0:C, 1].set(b_o)

    R2 = _round_up(max(C, F), 8)
    bvec2 = jnp.zeros((R2, 2), jnp.float32)
    bvec2 = bvec2.at[0:F, 0].set(b_f1)
    bvec2 = bvec2.at[0:C, 1].set(b_f2)

    return dict(W1=W1, bvec1=bvec1, gn1_w=gn1_w, gn1_b=gn1_b,
                Wf1=w_f1.astype(jnp.bfloat16), Wf2=w_f2.astype(jnp.bfloat16),
                bvec2=bvec2, gn2_w=gn2_w, gn2_b=gn2_b)


def reference(x, raw):
    """Pure-JAX f32 reference mirroring the PyTorch module (channels-first)."""
    (gn1_w, gn1_b, w_qkv, b_qkv, w_o, b_o,
     gn2_w, gn2_b, w_f1, b_f1, w_f2, b_f2) = raw
    C = x.shape[1]
    x = x.astype(jnp.float32)

    def gn(z, w, b):
        mu = jnp.mean(z, axis=(1, 2, 3), keepdims=True)
        var = jnp.mean(jnp.square(z - mu), axis=(1, 2, 3), keepdims=True)
        zn = (z - mu) * jax.lax.rsqrt(var + EPS)
        return zn * w[None, :, None, None] + b[None, :, None, None]

    def conv1x1(z, w, b):
        return jnp.einsum('dc,bcpn->bdpn', w, z) + b[None, :, None, None]

    y = gn(x, gn1_w, gn1_b)
    qkv = conv1x1(y, w_qkv, b_qkv)
    q, k, v = qkv[:, 0:1], qkv[:, 1:1 + C], qkv[:, 1 + C:]
    scores = jax.nn.softmax(q, axis=-1)                     # over N (patches)
    ctx = jnp.sum(k * scores, axis=-1, keepdims=True)
    out = jax.nn.relu(v) * ctx
    x1 = x + conv1x1(out, w_o, b_o)
    y2 = gn(x1, gn2_w, gn2_b)
    h = conv1x1(y2, w_f1, b_f1)
    h = h * jax.nn.sigmoid(h)                               # SiLU
    return x1 + conv1x1(h, w_f2, b_f2)


if __name__ == "__main__":
    key = jax.random.PRNGKey(0)
    kx, kp = jax.random.split(key)
    B, C, P, N, F = 2, 32, 8, 16, 64       # (batch, embed_dim, pixels/patch, patches, ffn dim)
    x = jax.random.normal(kx, (B, C, P, N), jnp.float32)
    raw = init_params(kp, C, F)
    packed = pack_params(raw, C, F)

    out = jax.block_until_ready(linear_attn_ffn(x, packed))
    ref = reference(x, raw)
    assert out.shape == x.shape
    max_err = float(jnp.max(jnp.abs(out - ref)))
    # bf16 MXU inputs (incl. selector path) with f32 accumulation + approx reciprocal
    if max_err < 5e-3:
        print("KERNEL_OK")
    else:
        print(f"MISMATCH max_err={max_err}")
</pallas_src>

<mosaic_0001>
module attributes {stable_mosaic.version = 11 : i64} {
  func.func @_ffn_kernel(%arg0: i32, %arg1: i32, %arg2: memref<1x32x2xf32, #tpu.memory_space<vmem>>, %arg3: memref<1x32x128xf32, #tpu.memory_space<vmem>>, %arg4: memref<64x32xbf16, #tpu.memory_space<vmem>>, %arg5: memref<32x64xbf16, #tpu.memory_space<vmem>>, %arg6: memref<64x2xf32, #tpu.memory_space<vmem>>, %arg7: memref<1x32x128xf32, #tpu.memory_space<vmem>>) attributes {dimension_semantics = [#tpu.dimension_semantics<parallel>, #tpu.dimension_semantics<parallel>], iteration_bounds = array<i64: 2, 1>, scalar_prefetch = 0 : i64, scratch_operands = 0 : i64, tpu.core_type = #tpu.core_type<tc>, window_params = [{transform_indices = @transform_0, window_bounds = array<i64: 1, 32, 2>}, {transform_indices = @transform_1, window_bounds = array<i64: 1, 32, 128>}, {pipeline_mode = #tpu.pipeline_mode<synchronous>, transform_indices = @transform_2, window_bounds = array<i64: 64, 32>}, {pipeline_mode = #tpu.pipeline_mode<synchronous>, transform_indices = @transform_3, window_bounds = array<i64: 32, 64>}, {pipeline_mode = #tpu.pipeline_mode<synchronous>, transform_indices = @transform_4, window_bounds = array<i64: 64, 2>}, {transform_indices = @transform_5, window_bounds = array<i64: 1, 32, 128>}]} {
    %c0 = arith.constant 0 : index
    %c0_0 = arith.constant 0 : index
    %c0_1 = arith.constant 0 : index
    %0 = vector.load %arg3[%c0, %c0_0, %c0_1] : memref<1x32x128xf32, #tpu.memory_space<vmem>>, vector<1x32x128xf32>
    %1 = vector.shape_cast %0 : vector<1x32x128xf32> to vector<32x128xf32>
    %c0_2 = arith.constant 0 : index
    %c0_3 = arith.constant 0 : index
    %c0_4 = arith.constant 0 : index
    %2 = vector.load %arg2[%c0_2, %c0_3, %c0_4] : memref<1x32x2xf32, #tpu.memory_space<vmem>>, vector<1x32x1xf32>
    %3 = vector.shape_cast %2 : vector<1x32x1xf32> to vector<32x1xf32>
    %c0_5 = arith.constant 0 : index
    %c0_6 = arith.constant 0 : index
    %c1 = arith.constant 1 : index
    %4 = vector.load %arg2[%c0_5, %c0_6, %c1] : memref<1x32x2xf32, #tpu.memory_space<vmem>>, vector<1x32x1xf32>
    %5 = vector.shape_cast %4 : vector<1x32x1xf32> to vector<32x1xf32>
    %6 = vector.broadcast %3 : vector<32x1xf32> to vector<32x128xf32>
    %7 = arith.mulf %1, %6 : vector<32x128xf32>
    %8 = vector.broadcast %5 : vector<32x1xf32> to vector<32x128xf32>
    %9 = arith.addf %7, %8 : vector<32x128xf32>
    %c0_7 = arith.constant 0 : index
    %c0_8 = arith.constant 0 : index
    %10 = vector.load %arg6[%c0_7, %c0_8] : memref<64x2xf32, #tpu.memory_space<vmem>>, vector<64x1xf32>
    %c0_9 = arith.constant 0 : index
    %c1_10 = arith.constant 1 : index
    %11 = vector.load %arg6[%c0_9, %c1_10] : memref<64x2xf32, #tpu.memory_space<vmem>>, vector<32x1xf32>
    %c0_11 = arith.constant 0 : index
    %c0_12 = arith.constant 0 : index
    %12 = vector.load %arg4[%c0_11, %c0_12] : memref<64x32xbf16, #tpu.memory_space<vmem>>, vector<64x32xbf16>
    %13 = arith.truncf %9 : vector<32x128xf32> to vector<32x128xbf16>
    %cst = arith.constant dense<0.000000e+00> : vector<64x128xf32>
    %14 = tpu.matmul %12, %13, %cst {dimension_numbers = #tpu.dot_dimension_numbers<[1], [0], [0], [1], [0, 0, 1, 1], [], []>} : vector<64x32xbf16>, vector<32x128xbf16>, vector<64x128xf32> -> vector<64x128xf32>
    %15 = vector.broadcast %10 : vector<64x1xf32> to vector<64x128xf32>
    %16 = arith.addf %14, %15 : vector<64x128xf32>
    %17 = arith.negf %16 : vector<64x128xf32>
    %18 = math.exp %17 : vector<64x128xf32>
    %cst_13 = arith.constant 1.000000e+00 : f32
    %19 = vector.broadcast %cst_13 : f32 to vector<64x128xf32>
    %20 = arith.addf %19, %18 : vector<64x128xf32>
    %21 = arith.divf %19, %20 : vector<64x128xf32>
    %22 = arith.mulf %16, %21 : vector<64x128xf32>
    %c0_14 = arith.constant 0 : index
    %c0_15 = arith.constant 0 : index
    %23 = vector.load %arg5[%c0_14, %c0_15] : memref<32x64xbf16, #tpu.memory_space<vmem>>, vector<32x64xbf16>
    %24 = arith.truncf %22 : vector<64x128xf32> to vector<64x128xbf16>
    %cst_16 = arith.constant dense<0.000000e+00> : vector<32x128xf32>
    %25 = tpu.matmul %23, %24, %cst_16 {dimension_numbers = #tpu.dot_dimension_numbers<[1], [0], [0], [1], [0, 0, 1, 1], [], []>} : vector<32x64xbf16>, vector<64x128xbf16>, vector<32x128xf32> -> vector<32x128xf32>
    %26 = vector.broadcast %11 : vector<32x1xf32> to vector<32x128xf32>
    %27 = arith.addf %25, %26 : vector<32x128xf32>
    %28 = arith.addf %1, %27 : vector<32x128xf32>
    %c0_17 = arith.constant 0 : index
    %c0_18 = arith.constant 0 : index
    %c0_19 = arith.constant 0 : index
    %29 = vector.load %arg7[%c0_17, %c0_18, %c0_19] : memref<1x32x128xf32, #tpu.memory_space<vmem>>, vector<1x32x128xf32>
    %30 = vector.shape_cast %29 : vector<1x32x128xf32> to vector<32x128xf32>
    %31 = vector.shape_cast %28 : vector<32x128xf32> to vector<1x32x128xf32>
    tpu.vector_store %arg7[%c0_17, %c0_18, %c0_19], %31 {strides = array<i32>} : memref<1x32x128xf32, #tpu.memory_space<vmem>>, vector<1x32x128xf32>,
    return
  }
  func.func @transform_0(%arg0: i32, %arg1: i32) -> (i32, i32, i32) {
    %c0_i32 = arith.constant 0 : i32
    %c0_i32_0 = arith.constant 0 : i32
    %c0_i32_1 = arith.constant 0 : i32
    return %arg0, %c0_i32, %c0_i32_0 : i32, i32, i32
  }
  func.func @transform_1(%arg0: i32, %arg1: i32) -> (i32, i32, i32) {
    %c0_i32 = arith.constant 0 : i32
    %c0_i32_0 = arith.constant 0 : i32
    return %arg0, %c0_i32, %arg1 : i32, i32, i32
  }
  func.func @transform_2(%arg0: i32, %arg1: i32) -> (i32, i32) {
    %c0_i32 = arith.constant 0 : i32
    %c0_i32_0 = arith.constant 0 : i32
    %c0_i32_1 = arith.constant 0 : i32
    return %c0_i32, %c0_i32_0 : i32, i32
  }
  func.func @transform_3(%arg0: i32, %arg1: i32) -> (i32, i32) {
    %c0_i32 = arith.constant 0 : i32
    %c0_i32_0 = arith.constant 0 : i32
    %c0_i32_1 = arith.constant 0 : i32
    return %c0_i32, %c0_i32_0 : i32, i32
  }
  func.func @transform_4(%arg0: i32, %arg1: i32) -> (i32, i32) {
    %c0_i32 = arith.constant 0 : i32
    %c0_i32_0 = arith.constant 0 : i32
    %c0_i32_1 = arith.constant 0 : i32
    return %c0_i32, %c0_i32_0 : i32, i32
  }
  func.func @transform_5(%arg0: i32, %arg1: i32) -> (i32, i32, i32) {
    %c0_i32 = arith.constant 0 : i32
    %c0_i32_0 = arith.constant 0 : i32
    return %arg0, %c0_i32, %arg1 : i32, i32, i32
  }
}

module attributes {stable_mosaic.version = 11 : i64} {
  func.func @_attn_x1_kernel(%arg0: i32, %arg1: i32, %arg2: memref<1x32x2xf32, #tpu.memory_space<vmem>>, %arg3: memref<1x32x128xf32, #tpu.memory_space<vmem>>, %arg4: memref<128x8xbf16, #tpu.memory_space<vmem>>, %arg5: memref<8x128xbf16, #tpu.memory_space<vmem>>, %arg6: memref<104x32xbf16, #tpu.memory_space<vmem>>, %arg7: memref<72x2xf32, #tpu.memory_space<vmem>>, %arg8: memref<1x32x128xf32, #tpu.memory_space<vmem>>, %arg9: memref<1x1x8x128xf32, #tpu.memory_space<vmem>>) attributes {dimension_semantics = [#tpu.dimension_semantics<parallel>, #tpu.dimension_semantics<parallel>], iteration_bounds = array<i64: 2, 1>, scalar_prefetch = 0 : i64, scratch_operands = 0 : i64, tpu.core_type = #tpu.core_type<tc>, window_params = [{transform_indices = @transform_0, window_bounds = array<i64: 1, 32, 2>}, {transform_indices = @transform_1, window_bounds = array<i64: 1, 32, 128>}, {pipeline_mode = #tpu.pipeline_mode<synchronous>, transform_indices = @transform_2, window_bounds = array<i64: 128, 8>}, {pipeline_mode = #tpu.pipeline_mode<synchronous>, transform_indices = @transform_3, window_bounds = array<i64: 8, 128>}, {pipeline_mode = #tpu.pipeline_mode<synchronous>, transform_indices = @transform_4, window_bounds = array<i64: 104, 32>}, {pipeline_mode = #tpu.pipeline_mode<synchronous>, transform_indices = @transform_5, window_bounds = array<i64: 72, 2>}, {transform_indices = @transform_6, window_bounds = array<i64: 1, 32, 128>}, {transform_indices = @transform_7, window_bounds = array<i64: 1, 1, 8, 128>}]} {
    %c0 = arith.constant 0 : index
    %c0_0 = arith.constant 0 : index
    %c0_1 = arith.constant 0 : index
    %0 = vector.load %arg3[%c0, %c0_0, %c0_1] : memref<1x32x128xf32, #tpu.memory_space<vmem>>, vector<1x32x128xf32>
    %1 = vector.shape_cast %0 : vector<1x32x128xf32> to vector<32x128xf32>
    %c0_2 = arith.constant 0 : index
    %c0_3 = arith.constant 0 : index
    %c0_4 = arith.constant 0 : index
    %2 = vector.load %arg2[%c0_2, %c0_3, %c0_4] : memref<1x32x2xf32, #tpu.memory_space<vmem>>, vector<1x32x1xf32>
    %3 = vector.shape_cast %2 : vector<1x32x1xf32> to vector<32x1xf32>
    %c0_5 = arith.constant 0 : index
    %c0_6 = arith.constant 0 : index
    %c1 = arith.constant 1 : index
    %4 = vector.load %arg2[%c0_5, %c0_6, %c1] : memref<1x32x2xf32, #tpu.memory_space<vmem>>, vector<1x32x1xf32>
    %5 = vector.shape_cast %4 : vector<1x32x1xf32> to vector<32x1xf32>
    %6 = vector.broadcast %3 : vector<32x1xf32> to vector<32x128xf32>
    %7 = arith.mulf %1, %6 : vector<32x128xf32>
    %8 = vector.broadcast %5 : vector<32x1xf32> to vector<32x128xf32>
    %9 = arith.addf %7, %8 : vector<32x128xf32>
    %10 = arith.truncf %9 : vector<32x128xf32> to vector<32x128xbf16>
    %c0_7 = arith.constant 0 : index
    %c0_8 = arith.constant 0 : index
    %11 = vector.load %arg7[%c0_7, %c0_8] : memref<72x2xf32, #tpu.memory_space<vmem>>, vector<72x1xf32>
    %c0_9 = arith.constant 0 : index
    %c1_10 = arith.constant 1 : index
    %12 = vector.load %arg7[%c0_9, %c1_10] : memref<72x2xf32, #tpu.memory_space<vmem>>, vector<32x1xf32>
    %c0_11 = arith.constant 0 : index
    %c0_12 = arith.constant 0 : index
    %13 = vector.load %arg6[%c0_11, %c0_12] : memref<104x32xbf16, #tpu.memory_space<vmem>>, vector<72x32xbf16>
    %cst = arith.constant dense<0.000000e+00> : vector<72x128xf32>
    %14 = tpu.matmul %13, %10, %cst {dimension_numbers = #tpu.dot_dimension_numbers<[1], [0], [0], [1], [0, 0, 1, 1], [], []>} : vector<72x32xbf16>, vector<32x128xbf16>, vector<72x128xf32> -> vector<72x128xf32>
    %15 = vector.broadcast %11 : vector<72x1xf32> to vector<72x128xf32>
    %16 = arith.addf %14, %15 : vector<72x128xf32>
    %17 = vector.extract_strided_slice %16 {offsets = [0, 0], sizes = [32, 128], strides = [1, 1]} : vector<72x128xf32> to vector<32x128xf32>
    %18 = vector.extract_strided_slice %16 {offsets = [32, 0], sizes = [32, 128], strides = [1, 1]} : vector<72x128xf32> to vector<32x128xf32>
    %19 = vector.extract_strided_slice %16 {offsets = [64, 0], sizes = [1, 128], strides = [1, 1]} : vector<72x128xf32> to vector<1x128xf32>
    %cst_13 = arith.constant dense<0xFF800000> : vector<1xf32>
    %20 = vector.multi_reduction <maximumf>, %19, %cst_13 [1] : vector<1x128xf32> to vector<1xf32>
    %21 = vector.shape_cast %20 : vector<1xf32> to vector<1x1xf32>
    %22 = vector.broadcast %21 : vector<1x1xf32> to vector<1x128xf32>
    %23 = arith.subf %19, %22 : vector<1x128xf32>
    %24 = math.exp %23 : vector<1x128xf32>
    %c0_14 = arith.constant 0 : index
    %c0_15 = arith.constant 0 : index
    %25 = vector.load %arg4[%c0_14, %c0_15] : memref<128x8xbf16, #tpu.memory_space<vmem>>, vector<128x8xbf16>
    %26 = arith.truncf %24 : vector<1x128xf32> to vector<1x128xbf16>
    %27 = vector.shape_cast %26 : vector<1x128xbf16> to vector<1x128xbf16>
    %28 = vector.broadcast %27 : vector<1x128xbf16> to vector<8x128xbf16>
    %cst_16 = arith.constant dense<0.000000e+00> : vector<8x8xf32>
    %29 = tpu.matmul %28, %25, %cst_16 {dimension_numbers = #tpu.dot_dimension_numbers<[1], [0], [0], [1], [0, 0, 1, 1], [], []>} : vector<8x128xbf16>, vector<128x8xbf16>, vector<8x8xf32> -> vector<8x8xf32>
    %30 = vector.extract_strided_slice %29 {offsets = [0, 0], sizes = [1, 8], strides = [1, 1]} : vector<8x8xf32> to vector<1x8xf32>
    %31 = tpu.reciprocal %30 {approx = true} : vector<1x8xf32> -> vector<1x8xf32>
    %32 = vector.broadcast %24 : vector<1x128xf32> to vector<32x128xf32>
    %33 = arith.mulf %17, %32 : vector<32x128xf32>
    %34 = arith.truncf %33 : vector<32x128xf32> to vector<32x128xbf16>
    %cst_17 = arith.constant dense<0.000000e+00> : vector<32x8xf32>
    %35 = tpu.matmul %34, %25, %cst_17 {dimension_numbers = #tpu.dot_dimension_numbers<[1], [0], [0], [1], [0, 0, 1, 1], [], []>} : vector<32x128xbf16>, vector<128x8xbf16>, vector<32x8xf32> -> vector<32x8xf32>
    %36 = vector.broadcast %31 : vector<1x8xf32> to vector<32x8xf32>
    %37 = arith.mulf %35, %36 : vector<32x8xf32>
    %38 = arith.truncf %37 : vector<32x8xf32> to vector<32x8xbf16>
    %c0_18 = arith.constant 0 : index
    %c0_19 = arith.constant 0 : index
    %39 = vector.load %arg5[%c0_18, %c0_19] : memref<8x128xbf16, #tpu.memory_space<vmem>>, vector<8x128xbf16>
    %cst_20 = arith.constant dense<0.000000e+00> : vector<32x128xf32>
    %40 = tpu.matmul %38, %39, %cst_20 {dimension_numbers = #tpu.dot_dimension_numbers<[1], [0], [0], [1], [0, 0, 1, 1], [], []>} : vector<32x8xbf16>, vector<8x128xbf16>, vector<32x128xf32> -> vector<32x128xf32>
    %cst_21 = arith.constant 0.000000e+00 : f32
    %41 = vector.broadcast %cst_21 : f32 to vector<32x128xf32>
    %42 = arith.maximumf %18, %41 : vector<32x128xf32>
    %43 = arith.mulf %42, %40 : vector<32x128xf32>
    %c72 = arith.constant 72 : index
    %c0_22 = arith.constant 0 : index
    %44 = vector.load %arg6[%c72, %c0_22] : memref<104x32xbf16, #tpu.memory_space<vmem>>, vector<32x32xbf16>
    %45 = arith.truncf %43 : vector<32x128xf32> to vector<32x128xbf16>
    %cst_23 = arith.constant dense<0.000000e+00> : vector<32x128xf32>
    %46 = tpu.matmul %44, %45, %cst_23 {dimension_numbers = #tpu.dot_dimension_numbers<[1], [0], [0], [1], [0, 0, 1, 1], [], []>} : vector<32x32xbf16>, vector<32x128xbf16>, vector<32x128xf32> -> vector<32x128xf32>
    %47 = vector.broadcast %12 : vector<32x1xf32> to vector<32x128xf32>
    %48 = arith.addf %46, %47 : vector<32x128xf32>
    %49 = arith.addf %1, %48 : vector<32x128xf32>
    %c0_24 = arith.constant 0 : index
    %c0_25 = arith.constant 0 : index
    %c0_26 = arith.constant 0 : index
    %50 = vector.load %arg8[%c0_24, %c0_25, %c0_26] : memref<1x32x128xf32, #tpu.memory_space<vmem>>, vector<1x32x128xf32>
    %51 = vector.shape_cast %50 : vector<1x32x128xf32> to vector<32x128xf32>
    %52 = vector.shape_cast %49 : vector<32x128xf32> to vector<1x32x128xf32>
    tpu.vector_store %arg8[%c0_24, %c0_25, %c0_26], %52 {strides = array<i32>} : memref<1x32x128xf32, #tpu.memory_space<vmem>>, vector<1x32x128xf32>,
    %cst_27 = arith.constant dense<0.000000e+00> : vector<32xf32>
    %53 = vector.multi_reduction <add>, %49, %cst_27 [1] : vector<32x128xf32> to vector<32xf32>
    %54 = vector.shape_cast %53 : vector<32xf32> to vector<32x1xf32>
    %55 = arith.mulf %49, %49 : vector<32x128xf32>
    %cst_28 = arith.constant dense<0.000000e+00> : vector<32xf32>
    %56 = vector.multi_reduction <add>, %55, %cst_28 [1] : vector<32x128xf32> to vector<32xf32>
    %57 = vector.shape_cast %56 : vector<32xf32> to vector<32x1xf32>
    %cst_29 = arith.constant dense<0.000000e+00> : vector<1xf32>
    %58 = vector.multi_reduction <add>, %54, %cst_29 [0] : vector<32x1xf32> to vector<1xf32>
    %59 = vector.shape_cast %58 : vector<1xf32> to vector<1x1xf32>
    %cst_30 = arith.constant dense<0.000000e+00> : vector<1xf32>
    %60 = vector.multi_reduction <add>, %57, %cst_30 [0] : vector<32x1xf32> to vector<1xf32>
    %61 = vector.shape_cast %60 : vector<1xf32> to vector<1x1xf32>
    %62 = tpu.iota {dimensions = array<i32: 1>} : vector<8x128xi32>
    %c0_i32 = arith.constant 0 : i32
    %63 = vector.broadcast %c0_i32 : i32 to vector<8x128xi32>
    %64 = arith.cmpi eq, %62, %63 : vector<8x128xi32>
    %c1_i32 = arith.constant 1 : i32
    %65 = vector.broadcast %c1_i32 : i32 to vector<8x128xi32>
    %66 = arith.cmpi eq, %62, %65 : vector<8x128xi32>
    %cst_31 = arith.constant 0.000000e+00 : f32
    %67 = vector.shape_cast %61 : vector<1x1xf32> to vector<1x1xf32>
    %68 = vector.broadcast %67 : vector<1x1xf32> to vector<8x128xf32>
    %69 = vector.broadcast %cst_31 : f32 to vector<8x128xf32>
    %70 = arith.select %66, %68, %69 : vector<8x128xi1>, vector<8x128xf32>
    %71 = vector.shape_cast %59 : vector<1x1xf32> to vector<1x1xf32>
    %72 = vector.broadcast %71 : vector<1x1xf32> to vector<8x128xf32>
    %73 = arith.select %64, %72, %70 : vector<8x128xi1>, vector<8x128xf32>
    %c0_32 = arith.constant 0 : index
    %c0_33 = arith.constant 0 : index
    %c0_34 = arith.constant 0 : index
    %c0_35 = arith.constant 0 : index
    %74 = vector.load %arg9[%c0_32, %c0_33, %c0_34, %c0_35] : memref<1x1x8x128xf32, #tpu.memory_space<vmem>>, vector<1x1x8x128xf32>
    %75 = vector.shape_cast %74 : vector<1x1x8x128xf32> to vector<8x128xf32>
    %76 = vector.shape_cast %73 : vector<8x128xf32> to vector<1x1x8x128xf32>
    tpu.vector_store %arg9[%c0_32, %c0_33, %c0_34, %c0_35], %76 {strides = array<i32>} : memref<1x1x8x128xf32, #tpu.memory_space<vmem>>, vector<1x1x8x128xf32>,
    return
  }
  func.func @transform_0(%arg0: i32, %arg1: i32) -> (i32, i32, i32) {
    %c0_i32 = arith.constant 0 : i32
    %c0_i32_0 = arith.constant 0 : i32
    %c0_i32_1 = arith.constant 0 : i32
    return %arg0, %c0_i32, %c0_i32_0 : i32, i32, i32
  }
  func.func @transform_1(%arg0: i32, %arg1: i32) -> (i32, i32, i32) {
    %c0_i32 = arith.constant 0 : i32
    %c0_i32_0 = arith.constant 0 : i32
    return %arg0, %c0_i32, %arg1 : i32, i32, i32
  }
  func.func @transform_2(%arg0: i32, %arg1: i32) -> (i32, i32) {
    %c0_i32 = arith.constant 0 : i32
    %c0_i32_0 = arith.constant 0 : i32
    %c0_i32_1 = arith.constant 0 : i32
    return %c0_i32, %c0_i32_0 : i32, i32
  }
  func.func @transform_3(%arg0: i32, %arg1: i32) -> (i32, i32) {
    %c0_i32 = arith.constant 0 : i32
    %c0_i32_0 = arith.constant 0 : i32
    %c0_i32_1 = arith.constant 0 : i32
    return %c0_i32, %c0_i32_0 : i32, i32
  }
  func.func @transform_4(%arg0: i32, %arg1: i32) -> (i32, i32) {
    %c0_i32 = arith.constant 0 : i32
    %c0_i32_0 = arith.constant 0 : i32
    %c0_i32_1 = arith.constant 0 : i32
    return %c0_i32, %c0_i32_0 : i32, i32
  }
  func.func @transform_5(%arg0: i32, %arg1: i32) -> (i32, i32) {
    %c0_i32 = arith.constant 0 : i32
    %c0_i32_0 = arith.constant 0 : i32
    %c0_i32_1 = arith.constant 0 : i32
    return %c0_i32, %c0_i32_0 : i32, i32
  }
  func.func @transform_6(%arg0: i32, %arg1: i32) -> (i32, i32, i32) {
    %c0_i32 = arith.constant 0 : i32
    %c0_i32_0 = arith.constant 0 : i32
    return %arg0, %c0_i32, %arg1 : i32, i32, i32
  }
  func.func @transform_7(%arg0: i32, %arg1: i32) -> (i32, i32, i32, i32) {
    %c0_i32 = arith.constant 0 : i32
    %c0_i32_0 = arith.constant 0 : i32
    %c0_i32_1 = arith.constant 0 : i32
    return %arg0, %arg1, %c0_i32, %c0_i32_0 : i32, i32, i32, i32
  }
}

</mosaic_0001>

<bundles_post_ra>
// kernel: linear_attn_ffn.3
= control target key start
LH: loop header
LB: loop body
LE: loop exit
PB: predicated region body
PF: predicated region fallthrough
CT: control target
= control target key end

     0   :  { %s935_s18 = smov 0   ;;  %s937_s19 = smov 0   ;;  %s1044_s0 = inlined_call_operand.vmem [shape: f32[2,32,2], index: 0, kind: input, shape index: {}]   ;;  %s1045_s1 = inlined_call_operand.vmem [shape: f32[2,32,128], index: 1, kind: input, shape index: {}]   ;;  %s1046_s2 = inlined_call_operand.vmem [shape: bf16[64,32], index: 2, kind: input, shape index: {}]   ;;  %s1047_s3 = inlined_call_operand.vmem [shape: bf16[32,64], index: 3, kind: input, shape index: {}]   ;;  %s1048_s4 = inlined_call_operand.vmem [shape: f32[64,2], index: 4, kind: input, shape index: {}]   ;;  %s1049_s5 = inlined_call_operand.vmem [shape: f32[2,32,128], index: 5, kind: output, shape index: {}]  }
   0x1   :  { %s939_s20 = smov 0  }
   0x2 LB: > { %s27_s21 = sadd.s32 1, %s897_s19  ;;  %p738_p0 = scmp.ge.s32.totalorder %s901_s20, 1  ;;  %s901_s20 = sphi %s939_s20, %s15_s20   ;;  %s897_s19 = sphi %s937_s19, %s1051_s19   ;;  %s893_s18 = sphi %s935_s18, %s1050_s18  }
   0x3   : > { %p29_p1 = scmp.ge.s32.totalorder %s27_s21, 2  ;;  %p216_p2 = scmp.lt.s32.totalorder %s901_s20, 3 }
   0x5   : > { %s1053_s21 = smov (%p29_p1, %s27_s21), 0  ;;  %p217_p3 = pnand %p738_p0, %p216_p2 }
   0x6   : > { %p255_p4 = scmp.lt.s32.totalorder (!%p217_p3), %s893_s18, 1  ;;  %v903_v0 = vmov (!%p217_p3), 1   ;;  %v904_v1 = vmov (!%p217_p3), 0   ;;  %v841_v6 = vld [vmem:[%s1046_s2] sm:$0xff] (!%p217_p3)   ;;  %vm407_vm0 = vcmask (!%p217_p3), 261120   ;;  %v330_v8 = vld [vmem:[%s1048_s4 + $0x8] sm:$0xff] (!%p217_p3) }
   0x7   : > { %220 = sbr.rel (%p217_p3) target bundleno = 651 (0x28b), region = 40  ;;  %833 = vset.pattern.permute.xlu1 (!%p217_p3), %v903_v0  ;;  %832 = vset.pattern.permute.xlu0 (!%p217_p3), %v904_v1  ;;  %v329_v7 = vld [vmem:[%s1048_s4] sm:$0xff] (!%p217_p3)  ;;  %v331_v9 = vld [vmem:[%s1048_s4 + $0x10] sm:$0xff] (!%p217_p3)  ;;  %v332_v11 = vld [vmem:[%s1048_s4 + $0x18] sm:$0xff] (!%p217_p3)  ;;  %vm575_vm1 = vcmask (!%p217_p3), 523264  }
   0x8   : > { %786 = vmatprep.mubr.msk.bf16.mxu0 (!%p217_p3), %vm407_vm0, %v841_v6  ;;  %v333_v10 = vld [vmem:[%s1048_s4 + $0x20] sm:$0xff] (!%p217_p3)  ;;  %v335_v12 = vld [vmem:[%s1048_s4 + $0x30] sm:$0xff] (!%p217_p3)  ;;  %v334_v13 = vld [vmem:[%s1048_s4 + $0x28] sm:$0xff] (!%p217_p3) }
   0x9   : > { %v336_v14 = vld [vmem:[%s1048_s4 + $0x38] sm:$0xff] (!%p217_p3)  ;;  %v842_v37 = vld [vmem:[%s1046_s2 + $0x8] sm:$0xff] (!%p217_p3)   ;;  %v843_v38 = vld [vmem:[%s1046_s2 + $0x10] sm:$0xff] (!%p217_p3)  }
   0xa   : > { %v844_v39 = vld [vmem:[%s1046_s2 + $0x18] sm:$0xff] (!%p217_p3)   ;;  %v845_v40 = vld [vmem:[%s1047_s3] sm:$0xff] (!%p217_p3)  }
   0xb   : > { %802 = vmatprep.mubr.msk.bf16.mxu1 (!%p217_p3), %vm575_vm1, %v845_v40 }
   0xe   : > { %s1055_s18 = smov (!%p255_p4, %s893_s18), 1 }
   0xf   : > { %s953_s22 = sshll.u32 %s1055_s18, 5 }
  0x10   : > { %s259_s25 = scalar_lea.vmem %s1044_s0, %s953_s22  ;;  %s275_s13 = scalar_lea.vmem %s1049_s5, %s953_s22 }
  0x11   : > { %v281_v2 = vld [vmem:[%s259_s25] sm:$0xff]  ;;  %v282_v3 = vld [vmem:[%s259_s25 + $0x8] sm:$0xff]  ;;  %v283_v4 = vld [vmem:[%s259_s25 + $0x10] sm:$0xff] }
  0x12   : > { %310 = vperm.xlu1 %833, %v281_v2   ;;  %287 = vperm.xlu0 %832, %v281_v2   ;;  %v284_v5 = vld [vmem:[%s259_s25 + $0x18] sm:$0xff]  ;;  %s267_s25 = scalar_lea.vmem %s1045_s1, %s953_s22 }
  0x13   : > { %v991_v16 = vld [vmem:[%s267_s25] sm:$0xff]  ;;  %v993_v18 = vld [vmem:[%s267_s25 + $0x8] sm:$0xff]  ;;  %v997_v26 = vld [vmem:[%s267_s25 + $0x10] sm:$0xff] }
  0x14   : > { %v999_v29 = vld [vmem:[%s267_s25 + $0x18] sm:$0xff] }
  0x16   : > { %314 = vperm.xlu1 %833, %v282_v3   ;;  %292 = vperm.xlu0 %832, %v282_v3  }
  0x1a   : > { %834 = vset.pattern.permute.xlu1 %v904_v1  ;;  %297 = vperm.xlu0 %832, %v283_v4  }
  0x1b   : > { %302 = vperm.xlu1 %834, %v284_v5  }
  0x1e   : > { %835 = vset.pattern.permute.xlu0 %v903_v0 }
  0x1f   : > { %836 = vset.pattern.permute.xlu1 %v903_v0  ;;  %318 = vperm.xlu0 %835, %v283_v4  }
  0x20   : > { %322 = vperm.xlu1 %836, %v284_v5  }
  0x23   : > { %838 = vset.pattern.permute.xlu0 %v904_v1 }
  0x24   : > { %837 = vset.pattern.permute.xlu1 %v904_v1  ;;  %354 = vperm.xlu0 %838, %v330_v8  }
  0x25   : > { %349 = vperm.xlu1 %837, %v329_v7  }
  0x28   : > { %369 = vperm.xlu0 %838, %v333_v10  }
  0x29   : > { %359 = vperm.xlu1 %837, %v331_v9  }
  0x2c   : > { %379 = vperm.xlu0 %838, %v335_v12  }
  0x2d   : > { %364 = vperm.xlu1 %837, %v332_v11  }
  0x30   : > { %839 = vset.pattern.permute.xlu0 %v903_v0 }
  0x31   : > { %374 = vperm.xlu1 %837, %v334_v13   ;;  %550 = vperm.xlu0 %839, %v329_v7  }
  0x35   : > { %384 = vperm.xlu1 %837, %v336_v14   ;;  %562 = vperm.xlu0 %839, %v332_v11  }
  0x39   : > { %840 = vset.pattern.permute.xlu1 %v903_v0 }
  0x3a   : > { %554 = vperm.xlu1 %840, %v330_v8  }
  0x3e   : > { %558 = vperm.xlu1 %840, %v331_v9  }
  0x91   : > { %v311_v15 = vpop.permute.xlu1 %310  ;;  %v288_v17 = vpop.permute.xlu0 %287 }
  0x92   : > { %v305_v19 = vmul.f32 %v288_v17, %v991_v16 }
  0x94   : > { %v325_v23 = vadd.f32 %v311_v15, %v305_v19 }
  0x95   : > { %v315_v20 = vpop.permute.xlu1 %314  ;;  %v293_v21 = vpop.permute.xlu0 %292 }
  0x96   : > { %v306_v22 = vmul.f32 %v293_v21, %v993_v18 }
  0x98   : > { %v326_v24 = vadd.f32 %v315_v20, %v306_v22 }
  0x99   : > { %v298_v25 = vpop.permute.xlu0 %297 }
  0x9a   : > { %v303_v27 = vpop.permute.xlu1 %302  ;;  %v345_v28 = vpack.c.bf16 %v326_v24, %v325_v23  ;;  %v307_v30 = vmul.f32 %v298_v25, %v997_v26 }
  0x9b   : > { %v308_v31 = vmul.f32 %v303_v27, %v999_v29 }
  0x9c   : > { %782 = vmatprep.subr.bf16.mxu0 %v345_v28 }
  0x9d   : > { %783 = vmatpush3.bf16.msra.mxu0 %v345_v28 }
  0x9e   : > { %v319_v32 = vpop.permute.xlu0 %318 }
  0x9f   : > { %v327_v33 = vadd.f32 %v319_v32, %v307_v30  ;;  %v323_v34 = vpop.permute.xlu1 %322 }
  0xa0   : > { %v328_v35 = vadd.f32 %v323_v34, %v308_v31 }
  0xa2   : > { %v346_v36 = vpack.c.bf16 %v328_v35, %v327_v33 }
  0xa3   : > { %v355_v43 = vpop.permute.xlu0 %354 }
  0xa4   : > { %784 = vmatprep.subr.bf16.mxu0 %v346_v36  ;;  %v350_v41 = vpop.permute.xlu1 %349 }
  0xa5   : > { %785 = vmatpush3.bf16.msra.mxu0 %v346_v36 }
  0xa7   : > { %v370_v48 = vpop.permute.xlu0 %369 }
  0xa8   : > { %787 = vmatmul.mubr.msk.bf16.vlgmr.msra.gmra.mrb[0].mxu0 %vm407_vm0, %v842_v37  ;;  %v360_v42 = vpop.permute.xlu1 %359 }
  0xa9   : > { %790 = vmatprep.mubr.msk.bf16.mxu0 %vm407_vm0, %v843_v38 }
  0xab   : > { %v380_v59 = vpop.permute.xlu0 %379 }
  0xac   : > { %v365_v44 = vpop.permute.xlu1 %364 }
  0xb0   : > { %791 = vmatmul.mubr.msk.bf16.gmra.mrb[4].mxu0 %vm407_vm0, %v844_v39  ;;  %v375_v54 = vpop.permute.xlu1 %374 }
  0xb4   : > { %v385_v63 = vpop.permute.xlu1 %384 }
 0x17b   : > { %v788_v45 = vpop.f32.mrb[0].mxu0 }
 0x17c   : > { %v1019_v46 = vadd.f32 %v788_v45, %v360_v42  ;;  %v454_v47 = vpop.f32.mrb[1].mxu0 }
 0x17d   : > { %v455_v49 = vadd.f32 %v454_v47, %v350_v41  ;;  %v789_v50 = vpop.f32.mrb[2].mxu0 }
 0x17e   : > { %v755_v51 = vmul.f32 -1.442695, %v1019_v46  ;;  %v466_v52 = vadd.f32 %v789_v50, %v365_v44  ;;  %v457_v53 = vpop.f32.mrb[3].mxu0  ;;  %v555_v50 = vpop.permute.xlu1 %554 }
 0x17f   : > { %v753_v55 = vmul.f32 -1.442695, %v455_v49  ;;  %v458_v56 = vadd.f32 %v457_v53, %v355_v43 }
 0x180   : > { %847 = vpow2.f32 %v755_v51  ;;  %v756_v57 = vmul.f32 -1.442695, %v466_v52  ;;  %v551_v51 = vpop.permute.xlu0 %550 }
 0x181   : > { %849 = vpow2.f32 %v753_v55  ;;  %v754_v58 = vmul.f32 -1.442695, %v458_v56 }
 0x182   : > { %851 = vpow2.f32 %v756_v57 }
 0x183   : > { %853 = vpow2.f32 %v754_v58  ;;  %v792_v60 = vpop.f32.mrb[4].mxu0 }
 0x184   : > { %v479_v61 = vadd.f32 %v792_v60, %v380_v59  ;;  %v470_v62 = vpop.f32.mrb[5].mxu0 }
 0x185   : > { %v471_v0 = vadd.f32 %v470_v62, %v370_v48  ;;  %v793_v1 = vpop.f32.mrb[6].mxu0 }
 0x186   : > { %v759_v2 = vmul.f32 -1.442695, %v479_v61  ;;  %v482_v3 = vadd.f32 %v793_v1, %v385_v63  ;;  %v473_v4 = vpop.f32.mrb[7].mxu0 }
 0x187   : > { %v757_v5 = vmul.f32 -1.442695, %v471_v0  ;;  %v474_v6 = vadd.f32 %v473_v4, %v375_v54 }
 0x188   : > { %855 = vpow2.f32 %v759_v2  ;;  %v760_v7 = vmul.f32 -1.442695, %v482_v3 }
 0x189   : > { %857 = vpow2.f32 %v757_v5  ;;  %v758_v8 = vmul.f32 -1.442695, %v474_v6 }
 0x18a   : > { %v848_v9 = vpop.eup %847  ;;  %859 = vpow2.f32 %v760_v7 }
 0x18b   : > { %v850_v10 = vpop.eup %849  ;;  %v511_v11 = vadd.f32 1.0, %v848_v9  ;;  %861 = vpow2.f32 %v758_v8 }
 0x18c   : > { %v852_v12 = vpop.eup %851  ;;  %v509_v13 = vadd.f32 1.0, %v850_v10 }
 0x18d   : > { %v854_v14 = vpop.eup %853  ;;  %863 = vrcp.f32 %v511_v11  ;;  %v512_v15 = vadd.f32 1.0, %v852_v12 }
 0x18e   : > { %865 = vrcp.f32 %v509_v13  ;;  %v510_v17 = vadd.f32 1.0, %v854_v14 }
 0x18f   : > { %867 = vrcp.f32 %v512_v15 }
 0x190   : > { %869 = vrcp.f32 %v510_v17 }
 0x192   : > { %v856_v19 = vpop.eup %855 }
 0x193   : > { %v858_v20 = vpop.eup %857  ;;  %v515_v21 = vadd.f32 1.0, %v856_v19 }
 0x194   : > { %v860_v22 = vpop.eup %859  ;;  %v513_v23 = vadd.f32 1.0, %v858_v20 }
 0x195   : > { %v862_v24 = vpop.eup %861  ;;  %871 = vrcp.f32 %v515_v21  ;;  %v516_v25 = vadd.f32 1.0, %v860_v22 }
 0x196   : > { %873 = vrcp.f32 %v513_v23  ;;  %v514_v27 = vadd.f32 1.0, %v862_v24 }
 0x197   : > { %v864_v28 = vpop.eup %863  ;;  %875 = vrcp.f32 %v516_v25 }
 0x198   : > { %v866_v30 = vpop.eup %865  ;;  %877 = vrcp.f32 %v514_v27  ;;  %v535_v33 = vmul.f32 %v864_v28, %v1019_v46 }
 0x199   : > { %v868_v31 = vpop.eup %867  ;;  %v533_v35 = vmul.f32 %v866_v30, %v455_v49  ;;  %v846_v49 = vld [vmem:[%s1047_s3 + $0x8] sm:$0xff]  }
 0x19a   : > { %v870_v32 = vpop.eup %869  ;;  %v536_v34 = vmul.f32 %v868_v31, %v466_v52  ;;  %v559_v52 = vpop.permute.xlu1 %558 }
 0x19b   : > { %v534_v36 = vmul.f32 %v870_v32, %v458_v56  ;;  %v563_v56 = vpop.permute.xlu0 %562 }
 0x19c   : > { %v546_v37 = vpack.c.bf16 %v536_v34, %v535_v33 }
 0x19d   : > { %v545_v38 = vpack.c.bf16 %v534_v36, %v533_v35 }
 0x19f   : > { %v872_v39 = vpop.eup %871  ;;  %794 = vmatprep.subr.bf16.mxu1 %v545_v38 }
 0x1a0   : > { %v874_v40 = vpop.eup %873  ;;  %795 = vmatpush3.bf16.msra.mxu1 %v545_v38  ;;  %v539_v43 = vmul.f32 %v872_v39, %v479_v61 }
 0x1a1   : > { %v876_v41 = vpop.eup %875  ;;  %796 = vmatprep.subr.bf16.mxu1 %v546_v37  ;;  %v537_v45 = vmul.f32 %v874_v40, %v471_v0 }
 0x1a2   : > { %v878_v42 = vpop.eup %877  ;;  %v540_v44 = vmul.f32 %v876_v41, %v482_v3 }
 0x1a3   : > { %v538_v47 = vmul.f32 %v878_v42, %v474_v6 }
 0x1a4   : > { %797 = vmatpush3.bf16.msra.mxu1 %v546_v37  ;;  %v548_v48 = vpack.c.bf16 %v540_v44, %v539_v43 }
 0x1a5   : > { %v547_v46 = vpack.c.bf16 %v538_v47, %v537_v45 }
 0x1a7   : > { %798 = vmatprep.subr.bf16.mxu1 %v547_v46 }
 0x1a8   : > { %799 = vmatpush3.bf16.msra.mxu1 %v547_v46 }
 0x1a9   : > { %800 = vmatprep.subr.bf16.mxu1 %v548_v48 }
 0x1ac   : > { %801 = vmatpush3.bf16.msra.mxu1 %v548_v48 }
 0x1af   : > { %803 = vmatmul.mubr.msk.bf16.vlgmr.msra.gmra.mrb[0].mxu1 %vm575_vm1, %v846_v49 }
 0x282   : > { %v804_v53 = vpop.f32.mrb[0].mxu1 }
 0x283   : > { %v625_v54 = vadd.f32 %v804_v53, %v559_v52  ;;  %v616_v55 = vpop.f32.mrb[1].mxu1 }
 0x284   : > { %v617_v57 = vadd.f32 %v616_v55, %v551_v51  ;;  %v805_v58 = vpop.f32.mrb[2].mxu1 }
 0x285   : > { %v633_v59 = vadd.f32 %v625_v54, %v997_v26  ;;  %v628_v60 = vadd.f32 %v805_v58, %v563_v56  ;;  %v619_v61 = vpop.f32.mrb[3].mxu1 }
 0x286   : > { %v631_v62 = vadd.f32 %v617_v57, %v991_v16  ;;  %v620_v63 = vadd.f32 %v619_v61, %v555_v50 }
 0x287   : > { %637 = vst [vmem:[%s275_s13 + $0x10] sm:$0xff] %v633_v59  ;;  %v634_v0 = vadd.f32 %v628_v60, %v999_v29 }
 0x288   : > { %635 = vst [vmem:[%s275_s13] sm:$0xff] %v631_v62  ;;  %v632_v1 = vadd.f32 %v620_v63, %v993_v18 }
 0x289   : > { %638 = vst [vmem:[%s275_s13 + $0x18] sm:$0xff] %v634_v0 }
 0x28a   : > { %636 = vst [vmem:[%s275_s13 + $0x8] sm:$0xff] %v632_v1 }
 0x28b PF: > { %s15_s20 = sadd.s32 1, %s901_s20   ;;  %s1050_s18 = smov %s897_s19 }
 0x28c   : > { %p12_p5 = scmp.ge.s32.totalorder %s15_s20, 4   ;;  %s1051_s19 = smov %s1053_s21 }
 0x28e   :  { %14 = sbr.rel (!%p12_p5) target bundleno = 2 (0x2), region = 73 }

// kernel: linear_attn_ffn.2
= control target key start
LH: loop header
LB: loop body
LE: loop exit
PB: predicated region body
PF: predicated region fallthrough
CT: control target
= control target key end

     0   :  { %s1387_s24 = smov 0   ;;  %s1389_s25 = smov 0   ;;  %s1573_s0 = inlined_call_operand.vmem [shape: f32[2,32,2], index: 0, kind: input, shape index: {}]   ;;  %s1574_s1 = inlined_call_operand.vmem [shape: f32[2,32,128], index: 1, kind: input, shape index: {}]   ;;  %s1575_s2 = inlined_call_operand.vmem [shape: bf16[128,8], index: 2, kind: input, shape index: {}]   ;;  %s1576_s3 = inlined_call_operand.vmem [shape: bf16[8,128], index: 3, kind: input, shape index: {}]   ;;  %s1577_s4 = inlined_call_operand.vmem [shape: bf16[104,32], index: 4, kind: input, shape index: {}]   ;;  %s1578_s5 = inlined_call_operand.vmem [shape: f32[72,2], index: 5, kind: input, shape index: {}]   ;;  %s1579_s6 = inlined_call_operand.vmem [shape: f32[2,32,128], index: 6, kind: output, shape index: {0}]   ;;  %s1580_s7 = inlined_call_operand.vmem [shape: f32[2,1,8,128], index: 7, kind: output, shape index: {1}]  }
   0x1   :  { %s1391_s26 = smov 0  }
   0x2 LB: > { %s30_s27 = sadd.s32 1, %s1337_s25  ;;  %p1116_p0 = scmp.ge.s32.totalorder %s1341_s26, 1  ;;  %s1341_s26 = sphi %s1391_s26, %s18_s26   ;;  %s1337_s25 = sphi %s1389_s25, %s1582_s25   ;;  %s1333_s24 = sphi %s1387_s24, %s1581_s24  }
   0x3   : > { %p32_p1 = scmp.ge.s32.totalorder %s30_s27, 2  ;;  %p271_p2 = scmp.lt.s32.totalorder %s1341_s26, 3 }
   0x5   : > { %s1584_s27 = smov (%p32_p1, %s30_s27), 0  ;;  %p272_p3 = pnand %p1116_p0, %p271_p2 }
   0x6   : > { %p321_p4 = scmp.lt.s32.totalorder (!%p272_p3), %s1333_s24, 1  ;;  %v1343_v0 = vmov (!%p272_p3), 1   ;;  %v1344_v1 = vmov (!%p272_p3), 0   ;;  %v1345_v6 = vmov (!%p272_p3), 0.0   ;;  %vm1346_vm0 = vmmov (!%p272_p3), 0   ;;  %v412_v7 = vld [vmem:[%s1578_s5 + $0x40] sm:$0xff] (!%p272_p3) }
   0x7   : > { %275 = sbr.rel (%p272_p3) target bundleno = 1423 (0x58f), region = 44  ;;  %1294 = vset.pattern.permute.xlu1 (!%p272_p3), %v1343_v0  ;;  %1293 = vset.pattern.permute.xlu0 (!%p272_p3), %v1344_v1  ;;  %v1426_v8 = vld [vmem:[%s1578_s5] sm:$0xff] (!%p272_p3)  ;;  %v405_v9 = vld [vmem:[%s1578_s5 + $0x8] sm:$0xff] (!%p272_p3)  ;;  %v406_v10 = vld [vmem:[%s1578_s5 + $0x10] sm:$0xff] (!%p272_p3)  ;;  %vm490_vm1 = vcmask (!%p272_p3), 261120   ;;  %vm578_vm2 = vcmask (!%p272_p3), 1040384  }
   0x8   : > { %1186 = vmatprep.subr.bf16.mxu0 (!%p272_p3), %v1345_v6  ;;  %1210 = vmatprep.subr.bf16.mxu1 (!%p272_p3), %v1345_v6  ;;  %v407_v11 = vld [vmem:[%s1578_s5 + $0x18] sm:$0xff] (!%p272_p3)  ;;  %v408_v12 = vld [vmem:[%s1578_s5 + $0x20] sm:$0xff] (!%p272_p3)  ;;  %v409_v13 = vld [vmem:[%s1578_s5 + $0x28] sm:$0xff] (!%p272_p3)  ;;  %vm775_vm3 = vcmask (!%p272_p3), 1043456   ;;  %vm768_vm4 = vcmask (!%p272_p3), 64512  }
   0x9   : > { %1190 = vmatprep.mubr.msk.bf16.mxu0 (!%p272_p3), %vm1346_vm0, %v1345_v6  ;;  %1226 = vmatprep.mubr.msk.bf16.mxu1 (!%p272_p3), %vm1346_vm0, %v1345_v6  ;;  %v410_v14 = vld [vmem:[%s1578_s5 + $0x30] sm:$0xff] (!%p272_p3)  ;;  %v411_v15 = vld [vmem:[%s1578_s5 + $0x38] sm:$0xff] (!%p272_p3)  ;;  %v1300_v38 = vld [vmem:[%s1577_s4] sm:$0xff] (!%p272_p3)  }
   0xa   : > { %v1301_v39 = vld [vmem:[%s1577_s4 + $0x8] sm:$0xff] (!%p272_p3)   ;;  %v1302_v40 = vld [vmem:[%s1577_s4 + $0x10] sm:$0xff] (!%p272_p3)   ;;  %v1303_v41 = vld [vmem:[%s1577_s4 + $0x18] sm:$0xff] (!%p272_p3)  }
   0xb   : > { %v1304_v42 = vld [vmem:[%s1577_s4 + $0x20] ss:$0 sps:$4 sm:$0xff] (!%p272_p3)   ;;  %v1306_v44 = vld [vmem:[%s1575_s2 + $0x8] sm:$0xff] (!%p272_p3)   ;;  %v1307_v45 = vld [vmem:[%s1575_s2 + $0x10] sm:$0xff] (!%p272_p3)  }
   0xc   : > { %v1305_v43 = vld [vmem:[%s1575_s2] sm:$0xff] (!%p272_p3)  }
   0xd   : > { %1211 = vmatpush3.bf16.msra.mxu1 (!%p272_p3), %v1305_v43 }
   0xe   : > { %s1586_s24 = smov (!%p321_p4, %s1333_s24), 1  ;;  %1212 = vmatprep.subr.bf16.mxu1 %v1345_v6 }
   0xf   : > { %s1408_s28 = sshll.u32 %s1586_s24, 5 }
  0x10   : > { %s325_s8 = scalar_lea.vmem %s1573_s0, %s1408_s28  ;;  %s333_s11 = scalar_lea.vmem %s1574_s1, %s1408_s28 }
  0x11   : > { %v354_v2 = vld [vmem:[%s325_s8] sm:$0xff]  ;;  %v355_v3 = vld [vmem:[%s325_s8 + $0x8] sm:$0xff]  ;;  %v356_v4 = vld [vmem:[%s325_s8 + $0x10] sm:$0xff]  ;;  %1213 = vmatpush3.bf16.msra.mxu1 %v1306_v44  ;;  %s341_s10 = scalar_lea.vmem %s1579_s6, %s1408_s28  ;;  %s1123_s28 = sshll.u32 %s1586_s24, 3 }
  0x12   : > { %383 = vperm.xlu1 %1294, %v354_v2   ;;  %360 = vperm.xlu0 %1293, %v354_v2   ;;  %v357_v5 = vld [vmem:[%s325_s8 + $0x18] sm:$0xff]  ;;  %v1454_v17 = vld [vmem:[%s333_s11] sm:$0xff]  ;;  %v1456_v19 = vld [vmem:[%s333_s11 + $0x8] sm:$0xff]  ;;  %s348_s13 = scalar_lea.vmem %s1580_s7, %s1123_s28 }
  0x13   : > { %v1460_v27 = vld [vmem:[%s333_s11 + $0x10] sm:$0xff]  ;;  %v1462_v30 = vld [vmem:[%s333_s11 + $0x18] sm:$0xff]  ;;  %1214 = vmatprep.subr.bf16.mxu1 %v1345_v6 }
  0x15   : > { %1215 = vmatpush3.bf16.msra.mxu1 %v1307_v45 }
  0x16   : > { %387 = vperm.xlu1 %1294, %v355_v3   ;;  %365 = vperm.xlu0 %1293, %v355_v3  }
  0x17   : > { %1216 = vmatprep.subr.bf16.mxu1 %v1345_v6 }
  0x1a   : > { %1295 = vset.pattern.permute.xlu1 %v1344_v1  ;;  %370 = vperm.xlu0 %1293, %v356_v4  }
  0x1b   : > { %375 = vperm.xlu1 %1295, %v357_v5  }
  0x1e   : > { %1296 = vset.pattern.permute.xlu0 %v1343_v0 }
  0x1f   : > { %1297 = vset.pattern.permute.xlu1 %v1343_v0  ;;  %391 = vperm.xlu0 %1296, %v356_v4  }
  0x20   : > { %395 = vperm.xlu1 %1297, %v357_v5   ;;  %v1308_v5 = vld [vmem:[%s1575_s2 + $0x18] sm:$0xff]  }
  0x21   : > { %1217 = vmatpush3.bf16.msra.mxu1 %v1308_v5 }
  0x22   : > { %1218 = vmatprep.subr.bf16.mxu1 %v1345_v6 }
  0x24   : > { %1298 = vset.pattern.permute.xlu1 %v1344_v1 }
  0x25   : > { %464 = vperm.xlu1 %1298, %v412_v7   ;;  %v1309_v7 = vld [vmem:[%s1575_s2 + $0x20] sm:$0xff]  }
  0x26   : > { %1219 = vmatpush3.bf16.msra.mxu1 %v1309_v7 }
  0x27   : > { %1220 = vmatprep.subr.bf16.mxu1 %v1345_v6 }
  0x29   : > { %424 = vperm.xlu1 %1298, %v1426_v8  }
  0x2d   : > { %429 = vperm.xlu1 %1298, %v405_v9  }
  0x31   : > { %434 = vperm.xlu1 %1298, %v406_v10  }
  0x35   : > { %439 = vperm.xlu1 %1298, %v407_v11  }
  0x39   : > { %444 = vperm.xlu1 %1298, %v408_v12  }
  0x3d   : > { %449 = vperm.xlu1 %1298, %v409_v13  }
  0x41   : > { %454 = vperm.xlu1 %1298, %v410_v14  }
  0x45   : > { %459 = vperm.xlu1 %1298, %v411_v15  }
  0x49   : > { %1299 = vset.pattern.permute.xlu1 %v1343_v0 }
  0x4a   : > { %847 = vperm.xlu1 %1299, %v405_v9   ;;  %v1310_v9 = vld [vmem:[%s1575_s2 + $0x28] sm:$0xff]  }
  0x4b   : > { %1221 = vmatpush3.bf16.msra.mxu1 %v1310_v9 }
  0x4c   : > { %1222 = vmatprep.subr.bf16.mxu1 %v1345_v6 }
  0x4e   : > { %851 = vperm.xlu1 %1299, %v406_v10   ;;  %v1311_v10 = vld [vmem:[%s1575_s2 + $0x30] sm:$0xff]  }
  0x4f   : > { %1223 = vmatpush3.bf16.msra.mxu1 %v1311_v10 }
  0x50   : > { %1224 = vmatprep.subr.bf16.mxu1 %v1345_v6 }
  0x52   : > { %855 = vperm.xlu1 %1299, %v407_v11   ;;  %v1312_v11 = vld [vmem:[%s1575_s2 + $0x38] sm:$0xff]  }
  0x53   : > { %1225 = vmatpush3.bf16.msra.mxu1 %v1312_v11 }
  0x91   : > { %v384_v16 = vpop.permute.xlu1 %383  ;;  %v361_v18 = vpop.permute.xlu0 %360 }
  0x92   : > { %v378_v20 = vmul.f32 %v361_v18, %v1454_v17 }
  0x94   : > { %v398_v24 = vadd.f32 %v384_v16, %v378_v20  ;;  %v605_v16 = vlaneseq }
  0x95   : > { %v388_v21 = vpop.permute.xlu1 %387  ;;  %v366_v22 = vpop.permute.xlu0 %365 }
  0x96   : > { %v379_v23 = vmul.f32 %v366_v22, %v1456_v19  ;;  %v606_v20 = vshrl.u32 %v605_v16, 7 }
  0x98   : > { %v399_v25 = vadd.f32 %v388_v21, %v379_v23  ;;  %v607_v21 = vsub.s32 0, %v606_v20 }
  0x99   : > { %v371_v26 = vpop.permute.xlu0 %370 }
  0x9a   : > { %v376_v28 = vpop.permute.xlu1 %375  ;;  %v402_v29 = vpack.c.bf16 %v399_v25, %v398_v24  ;;  %v380_v31 = vmul.f32 %v371_v26, %v1460_v27 }
  0x9b   : > { %v381_v32 = vmul.f32 %v376_v28, %v1462_v30 }
  0x9c   : > { %1187 = vmatpush3.bf16.msra.mxu0 %v402_v29 }
  0x9d   : > { %1188 = vmatprep.subr.bf16.mxu0 %v1345_v6 }
  0x9e   : > { %v392_v33 = vpop.permute.xlu0 %391 }
  0x9f   : > { %v400_v34 = vadd.f32 %v392_v33, %v380_v31  ;;  %v396_v35 = vpop.permute.xlu1 %395 }
  0xa0   : > { %v401_v36 = vadd.f32 %v396_v35, %v381_v32 }
  0xa2   : > { %v403_v37 = vpack.c.bf16 %v401_v36, %v400_v34 }
  0xa4   : > { %1189 = vmatpush3.bf16.msra.mxu0 %v403_v37  ;;  %v465_v62 = vpop.permute.xlu1 %464 }
  0xa5   : > { %1230 = vmatprep.subr.bf16.mxu0 %v1305_v43 }
  0xa7   : > { %1191 = vmatmul.mubr.msk.bf16.vlgmr.msra.gmra.mrb[0].mxu0 %vm490_vm1, %v1300_v38 }
  0xa8   : > { %1194 = vmatprep.mubr.msk.bf16.mxu0 %vm1346_vm0, %v1345_v6  ;;  %1231 = vmatpush3.bf16.msra.mxu0 %v1305_v43 }
  0xa9   : > { %1232 = vmatprep.subr.bf16.mxu0 %v1306_v44 }
  0xac   : > { %1233 = vmatpush3.bf16.msra.mxu0 %v1306_v44 }
  0xad   : > { %1234 = vmatprep.subr.bf16.mxu0 %v1307_v45 }
  0xaf   : > { %1195 = vmatmul.mubr.msk.bf16.gmra.mrb[4].mxu0 %vm490_vm1, %v1301_v39  ;;  %v767_v39 = vld [vmem:[%s1576_s3] sm:$0xf] }
  0xb0   : > { %1198 = vmatprep.mubr.msk.bf16.mxu0 %vm1346_vm0, %v1345_v6  ;;  %1235 = vmatpush3.bf16.msra.mxu0 %v1307_v45 }
  0xb1   : > { %1236 = vmatprep.subr.bf16.mxu0 %v1308_v5  ;;  %1264 = vmatprep.subr.msk.bf16.mxu1 %vm775_vm3, %v767_v39 }
  0xb4   : > { %1237 = vmatpush3.bf16.msra.mxu0 %v1308_v5 }
  0xb5   : > { %1238 = vmatprep.subr.bf16.mxu0 %v1309_v7 }
  0xb7   : > { %1199 = vmatmul.mubr.msk.bf16.gmra.mrb[8].mxu0 %vm490_vm1, %v1302_v40  ;;  %v777_v40 = vsel %vm775_vm3, %v767_v39, 0 }
  0xb8   : > { %1202 = vmatprep.mubr.msk.bf16.mxu0 %vm1346_vm0, %v1345_v6  ;;  %1239 = vmatpush3.bf16.msra.mxu0 %v1309_v7 }
  0xb9   : > { %1240 = vmatprep.subr.bf16.mxu0 %v1310_v9 }
  0xbc   : > { %1241 = vmatpush3.bf16.msra.mxu0 %v1310_v9 }
  0xbd   : > { %1242 = vmatprep.subr.bf16.mxu0 %v1311_v10 }
  0xbf   : > { %1203 = vmatmul.mubr.msk.bf16.gmra.mrb[12].mxu0 %vm490_vm1, %v1303_v41 }
  0xc0   : > { %1206 = vmatprep.mubr.msk.bf16.mxu0 %vm1346_vm0, %v1345_v6  ;;  %1243 = vmatpush3.bf16.msra.mxu0 %v1311_v10 }
  0xc1   : > { %1244 = vmatprep.subr.bf16.mxu0 %v1312_v11 }
  0xc4   : > { %1245 = vmatpush3.bf16.msra.mxu0 %v1312_v11 }
  0xc7   : > { %1207 = vmatmul.mubr.msk.bf16.gmra.mrb[16].mxu0 %vm490_vm1, %v1304_v42 }
 0x17a   : > { %v540_v46 = vpop.f32.mrb[0].mxu0 }
 0x17b   : > { %v1192_v47 = vpop.f32.mrb[1].mxu0 }
 0x17c   : > { %v543_v48 = vpop.f32.mrb[2].mxu0 }
 0x17d   : > { %v1193_v49 = vpop.f32.mrb[3].mxu0 }
 0x182   : > { %v548_v50 = vpop.f32.mrb[4].mxu0 }
 0x183   : > { %v1196_v51 = vpop.f32.mrb[5].mxu0 }
 0x184   : > { %v551_v52 = vpop.f32.mrb[6].mxu0 }
 0x185   : > { %v1197_v53 = vpop.f32.mrb[7].mxu0 }
 0x18a   : > { %v1507_v54 = vpop.f32.mrb[8].mxu0 }
 0x18b   : > { %v1200_v55 = vpop.f32.mrb[9].mxu0 }
 0x18c   : > { %v1509_v56 = vpop.f32.mrb[10].mxu0 }
 0x18d   : > { %v1201_v57 = vpop.f32.mrb[11].mxu0 }
 0x192   : > { %v1511_v58 = vpop.f32.mrb[12].mxu0 }
 0x193   : > { %v1204_v59 = vpop.f32.mrb[13].mxu0 }
 0x194   : > { %v1513_v60 = vpop.f32.mrb[14].mxu0 }
 0x195   : > { %v1205_v61 = vpop.f32.mrb[15].mxu0 }
 0x196   : > { %v1313_v61 = vld [vmem:[%s1577_s4 + $0x24] sm:$0xff]  }
 0x19a   : > { %v572_v63 = vpop.f32.mrb[16].mxu0 }
 0x19b   : > { %v573_v0 = vadd.f32 %v572_v63, %v465_v62  ;;  %v1208_v1 = vpop.f32.mrb[17].mxu0 }
 0x19c   : > { %v575_v2 = vpop.f32.mrb[18].mxu0 }
 0x19d   : > { %v1209_v3 = vpop.f32.mrb[19].mxu0  ;;  %v579_v4 = vsel %vm578_vm2, %v573_v0, -inf }
 0x19e   : > { %580 = vmax.xlane.f32.xlu0 %v579_v4 }
 0x1b4   : > { %843 = vperm.xlu0 %1296, %v1426_v8   ;;  %v425_v8 = vpop.permute.xlu1 %424 }
 0x1b5   : > { %v541_v24 = vadd.f32 %v540_v46, %v425_v8 }
 0x1b8   : > { %v430_v14 = vpop.permute.xlu1 %429 }
 0x1b9   : > { %v544_v25 = vadd.f32 %v543_v48, %v430_v14 }
 0x1bc   : > { %v435_v18 = vpop.permute.xlu1 %434 }
 0x1bd   : > { %v549_v26 = vadd.f32 %v548_v50, %v435_v18 }
 0x1c0   : > { %v440_v22 = vpop.permute.xlu1 %439 }
 0x1c1   : > { %v552_v29 = vadd.f32 %v551_v52, %v440_v22 }
 0x1c4   : > { %v445_v62 = vpop.permute.xlu1 %444 }
 0x1c5   : > { %v557_v3 = vadd.f32 %v1507_v54, %v445_v62  ;;  %v1314_v54 = vld [vmem:[%s1577_s4 + $0x2c] sm:$0xff]  }
 0x1c7   : > { %v828_v9 = vmax.f32 %v557_v3, 0.0 }
 0x1c8   : > { %v450_v63 = vpop.permute.xlu1 %449 }
 0x1c9   : > { %v560_v5 = vadd.f32 %v1509_v56, %v450_v63 }
 0x22b   : > { %v581_v12 = vpop.xlane.xlu0 %580 }
 0x22c   : > { %v582_v13 = vsub.f32 %v573_v0, %v581_v12  ;;  %v455_v0 = vpop.permute.xlu1 %454 }
 0x22d   : > { %v565_v2 = vadd.f32 %v1511_v58, %v455_v0 }
 0x22e   : > { %v583_v15 = vmul.f32 1.442695, %v582_v13  ;;  %v829_v13 = vmax.f32 %v560_v5, 0.0 }
 0x22f   : > { %v830_v7 = vmax.f32 %v565_v2, 0.0 }
 0x230   : > { %1315 = vpow2.f32 %v583_v15  ;;  %v460_v1 = vpop.permute.xlu1 %459 }
 0x231   : > { %v568_v4 = vadd.f32 %v1513_v60, %v460_v1 }
 0x233   : > { %v831_v11 = vmax.f32 %v568_v4, 0.0 }
 0x234   : > { %v848_v56 = vpop.permute.xlu1 %847 }
 0x238   : > { %v852_v60 = vpop.permute.xlu1 %851 }
 0x23a   : > { %v1316_v23 = vpop.eup %1315 }
 0x23b   : > { %v601_v6 = vpack.c.bf16 %v1316_v23, %v1316_v23  ;;  %v701_v28 = vrot.slane %v1316_v23, %v607_v21 }
 0x23d   : > { %v603_v31 = vpack.i.b16 %v601_v6, %v601_v6  ;;  %v702_v32 = vmul.f32 %v701_v28, %v541_v24  ;;  %v703_v33 = vmul.f32 %v701_v28, %v544_v25  ;;  %v704_v34 = vmul.f32 %v701_v28, %v549_v26  ;;  %v844_v24 = vpop.permute.xlu0 %843  ;;  %v856_v6 = vpop.permute.xlu1 %855 }
 0x23e   : > { %v705_v35 = vmul.f32 %v701_v28, %v552_v29 }
 0x23f   : > { %v608_v36 = vrot.slane %v603_v31, %v607_v21  ;;  %v706_v37 = vpack.c.bf16 %v703_v33, %v702_v32 }
 0x240   : > { %v707_v38 = vpack.c.bf16 %v705_v35, %v704_v34 }
 0x241   : > { %1227 = vmatmul.mubr.bf16.vlgmr.msra.gmra.mrb[0].mxu1 %v608_v36  ;;  %1246 = vmatprep.mubr.bf16.mxu0 %v706_v37 }
 0x242   : > { %1247 = vmatmul.mubr.bf16.vlgmr.msra.gmra.mrb[20].mxu0 %v707_v38  ;;  %1251 = vmatpush3.bf16.msra.mxu1 %v777_v40 }
 0x314   : > { %v691_v41 = vpop.f32.mrb[0].mxu1 }
 0x315   : > { %1317 = vrcp.f32 %v691_v41  ;;  %v1228_v42 = vpop.f32.mrb[1].mxu1  ;;  %v1248_v43 = vpop.f32.mrb[20].mxu0 }
 0x316   : > { %v694_v44 = vpop.f32.mrb[2].mxu1  ;;  %v742_v45 = vpop.f32.mrb[21].mxu0 }
 0x317   : > { %v1229_v46 = vpop.f32.mrb[3].mxu1  ;;  %v1249_v47 = vpop.f32.mrb[22].mxu0 }
 0x318   : > { %v745_v48 = vpop.f32.mrb[23].mxu0 }
 0x31f   : > { %v1318_v49 = vpop.eup %1317 }
 0x320   : > { %v760_v50 = vrot.slane %v1318_v49, %v607_v21 }
 0x322   : > { %v763_v51 = vmul.f32 %v1248_v43, %v760_v50  ;;  %v761_v52 = vmul.f32 %v760_v50, %v742_v45  ;;  %v764_v53 = vmul.f32 %v1249_v47, %v760_v50  ;;  %v762_v55 = vmul.f32 %v760_v50, %v745_v48 }
 0x324   : > { %v766_v57 = vpack.c.bf16 %v764_v53, %v763_v51  ;;  %v765_v59 = vpack.c.bf16 %v762_v55, %v761_v52 }
 0x326   : > { %1252 = vmatprep.mubr.msk.bf16.mxu1 %vm768_vm4, %v765_v59 }
 0x327   : > { %1253 = vmatmul.mubr.msk.bf16.vlgmr.msra.gmra.mrb[4].mxu1 %vm768_vm4, %v766_v57 }
 0x328   : > { %1260 = vmatprep.mubr.msk.bf16.mxu1 %vm490_vm1, %v1313_v61  ;;  %v970_v61 = vand.u32 127, %v605_v16 }
 0x32a   : > { %vm972_vm5 = vcmp.eq.s32.totalorder %v970_v61, 1  ;;  %vm971_vm6 = vcmp.eq.s32.totalorder %v970_v61, 0 }
 0x3fa   : > { %v1254_v10 = vpop.f32.mrb[4].mxu1 }
 0x3fb   : > { %v834_v8 = vmul.f32 %v1254_v10, %v830_v7  ;;  %v813_v12 = vpop.f32.mrb[5].mxu1 }
 0x3fc   : > { %v832_v14 = vmul.f32 %v828_v9, %v813_v12  ;;  %v1255_v15 = vpop.f32.mrb[6].mxu1 }
 0x3fd   : > { %v835_v18 = vmul.f32 %v1255_v15, %v831_v11  ;;  %v816_v20 = vpop.f32.mrb[7].mxu1 }
 0x3fe   : > { %v833_v21 = vmul.f32 %v829_v13, %v816_v20 }
 0x3ff   : > { %v841_v58 = vpack.c.bf16 %v835_v18, %v834_v8 }
 0x400   : > { %v840_v22 = vpack.c.bf16 %v833_v21, %v832_v14 }
 0x402   : > { %1256 = vmatprep.subr.bf16.mxu1 %v840_v22 }
 0x403   : > { %1257 = vmatpush3.bf16.msra.mxu1 %v840_v22 }
 0x404   : > { %1258 = vmatprep.subr.bf16.mxu1 %v841_v58 }
 0x407   : > { %1259 = vmatpush3.bf16.msra.mxu1 %v841_v58 }
 0x40a   : > { %1261 = vmatmul.mubr.msk.bf16.vlgmr.msra.gmra.mrb[8].mxu1 %vm490_vm1, %v1314_v54 }
 0x4dd   : > { %v1262_v23 = vpop.f32.mrb[8].mxu1 }
 0x4de   : > { %v917_v25 = vadd.f32 %v1262_v23, %v852_v60  ;;  %v908_v26 = vpop.f32.mrb[9].mxu1 }
 0x4df   : > { %v909_v28 = vadd.f32 %v908_v26, %v844_v24  ;;  %v1263_v29 = vpop.f32.mrb[10].mxu1 }
 0x4e0   : > { %v925_v31 = vadd.f32 %v917_v25, %v1460_v27  ;;  %v920_v32 = vadd.f32 %v1263_v29, %v856_v6  ;;  %v911_v33 = vpop.f32.mrb[11].mxu1 }
 0x4e1   : > { %v923_v34 = vadd.f32 %v909_v28, %v1454_v17  ;;  %v912_v35 = vadd.f32 %v911_v33, %v848_v56 }
 0x4e2   : > { %929 = vst [vmem:[%s341_s10 + $0x10] sm:$0xff] %v925_v31  ;;  %v926_v36 = vadd.f32 %v920_v32, %v1462_v30  ;;  %v941_v38 = vmul.f32 %v925_v31, %v925_v31 }
 0x4e3   : > { %927 = vst [vmem:[%s341_s10] sm:$0xff] %v923_v34  ;;  %v924_v37 = vadd.f32 %v912_v35, %v1456_v19  ;;  %931 = vadd.xlane.f32.xlu1 %v923_v34  ;;  %v939_v27 = vmul.f32 %v923_v34, %v923_v34 }
 0x4e4   : > { %930 = vst [vmem:[%s341_s10 + $0x18] sm:$0xff] %v926_v36  ;;  %v942_v40 = vmul.f32 %v926_v36, %v926_v36 }
 0x4e5   : > { %928 = vst [vmem:[%s341_s10 + $0x8] sm:$0xff] %v924_v37  ;;  %933 = vadd.xlane.f32.xlu0 %v924_v37  ;;  %v940_v39 = vmul.f32 %v924_v37, %v924_v37 }
 0x4e7   : > { %947 = vadd.xlane.f32.xlu1 %v941_v38 }
 0x4e9   : > { %945 = vadd.xlane.f32.xlu0 %v940_v39 }
 0x4eb   : > { %943 = vadd.xlane.f32.xlu1 %v939_v27 }
 0x4ed   : > { %935 = vadd.xlane.f32.xlu0 %v925_v31 }
 0x4ef   : > { %949 = vadd.xlane.f32.xlu1 %v942_v40 }
 0x4f1   : > { %937 = vadd.xlane.f32.xlu0 %v926_v36 }
 0x570   : > { %v932_v17 = vpop.xlane.xlu1 %931 }
 0x572   : > { %v934_v41 = vpop.xlane.xlu0 %933 }
 0x573   : > { %v951_v45 = vadd.f32 %v934_v41, %v932_v17 }
 0x574   : > { %v948_v30 = vpop.xlane.xlu1 %947 }
 0x576   : > { %v946_v42 = vpop.xlane.xlu0 %945 }
 0x578   : > { %v944_v43 = vpop.xlane.xlu1 %943 }
 0x579   : > { %v960_v19 = vadd.f32 %v946_v42, %v944_v43 }
 0x57a   : > { %v936_v44 = vpop.xlane.xlu0 %935 }
 0x57b   : > { %v961_v46 = vadd.f32 %v960_v19, %v948_v30  ;;  %v952_v48 = vadd.f32 %v951_v45, %v936_v44 }
 0x57c   : > { %v950_v47 = vpop.xlane.xlu1 %949 }
 0x57d   : > { %v962_v49 = vadd.f32 %v961_v46, %v950_v47 }
 0x57e   : > { %v938_v50 = vpop.xlane.xlu0 %937 }
 0x57f   : > { %v963_v51 = vrot.slane %v962_v49, 4  ;;  %v953_v52 = vadd.f32 %v952_v48, %v938_v50 }
 0x581   : > { %v964_v53 = vadd.f32 %v963_v51, %v962_v49  ;;  %v954_v55 = vrot.slane %v953_v52, 4 }
 0x583   : > { %v965_v57 = vrot.slane %v964_v53, 2  ;;  %v955_v59 = vadd.f32 %v954_v55, %v953_v52 }
 0x585   : > { %v966_v62 = vadd.f32 %v965_v57, %v964_v53  ;;  %v956_v63 = vrot.slane %v955_v59, 2 }
 0x587   : > { %v967_v0 = vrot.slane %v966_v62, 1  ;;  %v957_v1 = vadd.f32 %v956_v63, %v955_v59 }
 0x589   : > { %v968_v2 = vadd.f32 %v967_v0, %v966_v62  ;;  %v958_v3 = vrot.slane %v957_v1, 1 }
 0x58b   : > { %v973_v4 = vsel %vm972_vm5, %v968_v2, 0.0  ;;  %v959_v5 = vadd.f32 %v958_v3, %v957_v1 }
 0x58d   : > { %v974_v7 = vsel %vm971_vm6, %v959_v5, %v973_v4 }
 0x58e   : > { %975 = vst [vmem:[%s348_s13] sm:$0xff] %v974_v7 }
 0x58f PF: > { %s18_s26 = sadd.s32 1, %s1341_s26   ;;  %s1581_s24 = smov %s1337_s25 }
 0x590   : > { %p15_p5 = scmp.ge.s32.totalorder %s18_s26, 4   ;;  %s1582_s25 = smov %s1584_s27 }
 0x592   :  { %17 = sbr.rel (!%p15_p5) target bundleno = 2 (0x2), region = 89 }

</bundles_post_ra>
